<compile_context>
chip_gen: v7x
topology: tpu7x:2x2x1
jax: 0.10.0
libtpu: 0.0.40
codegen_flags: <defaults>
</compile_context>

<pallas_src>
import numpy as np
import jax
import jax.numpy as jnp
from jax.experimental import pallas as pl
from jax.experimental.pallas import tpu as pltpu

WINDOW_SIZE = 11
SIGMA = 1.5
C1 = 0.01 ** 2
C2 = 0.03 ** 2


def _gaussian_1d(window_size, sigma):
    xs = np.arange(window_size, dtype=np.float64)
    g = np.exp(-((xs - window_size // 2) ** 2) / (2.0 * sigma ** 2))
    return (g / g.sum()).astype(np.float32)


def _conv_matrix_left(n, g, radius):
    # A_v such that (A_v @ X)[i, w] = sum_k g[k - i + R] * X[k, w]
    # == zero-padded "same" vertical correlation (matches F.conv2d padding=R).
    ws = len(g)
    a = np.zeros((n, n), dtype=np.float32)
    for i in range(n):
        for k in range(n):
            t = k - i + radius
            if 0 <= t < ws:
                a[i, k] = g[t]
    return a


def _conv_matrix_right(n, g, radius):
    # A_h such that (X @ A_h)[h, j] = sum_k X[h, k] * g[k - j + R]
    # == zero-padded "same" horizontal correlation.
    ws = len(g)
    a = np.zeros((n, n), dtype=np.float32)
    for k in range(n):
        for j in range(n):
            t = k - j + radius
            if 0 <= t < ws:
                a[k, j] = g[t]
    return a


def _vmem_capacity_bytes():
    try:
        return int(pltpu.get_tpu_info().vmem_capacity_bytes)
    except Exception:
        return 64 * 1024 * 1024   # v7x per-core size; conservative fallback


def _choose_packing(P, H, W):
    # Lane-pack planes until the packed width reaches >=128 lanes (full vreg /
    # v5e MXU width); sublane-pack toward >=128 rows, but never pack (and pad)
    # far beyond the number of planes that actually exist.
    bh = 1 if W >= 128 else -(-128 // W)
    bv_dense = 1 if H >= 128 else -(-128 // H)
    bv = max(1, min(bv_dense, -(-P // bh)))
    return bv, bh


def _choose_supertiles_per_step(n_tiles, R, C, itemsize, budget):
    # Batch several supertiles per grid step (amortize ~0.35us/step and enlarge
    # the per-step DMA) while staying in the VMEM budget and keeping >=2 grid
    # steps so v7x's two TensorCores can split the "parallel" axis.
    base = 2 * (R * R + C * C) * 4 + 26 * R * C * 4   # conv mats + live f32 temporaries
    s = 1
    while (s < 8
           and 2 * (2 * s) <= n_tiles
           and base + 4 * (2 * s) * R * C * itemsize <= budget):
        s *= 2
    return s


def _make_ssim_kernel(S, bv, bh, H, W, mm_dtype):
    R = bv * H
    Ctot = bh * W

    def kernel(av_ref, ah_ref, ov_ref, oh_ref, x1_ref, x2_ref, out_ref):
        a_v = av_ref[...]          # (R, R)      block-diag kron(I_bv, A_v)
        a_h = ah_ref[...]          # (Ctot, Ctot) block-diag kron(I_bh, A_h)
        o_v = ov_ref[...]          # (bv, R)     per-plane row-sum selector
        o_h = oh_ref[...]          # (Ctot, bh)  per-plane col-sum selector

        for s in range(S):         # unrolled; S is small and static
            p1 = x1_ref[s].astype(jnp.float32)   # (R, Ctot)
            p2 = x2_ref[s].astype(jnp.float32)

            ops = (p1, p2, p1 * p1, p2 * p2, p1 * p2)

            # Horizontal "same" Gaussian pass: five dots against the same
            # resident A_H (no operand-stack concatenate); results are laid
            # side-by-side along lanes for the vertical pass.
            t_wide = jnp.concatenate(
                [jnp.dot(op.astype(mm_dtype), a_h,
                         preferred_element_type=jnp.float32) for op in ops],
                axis=1)                                   # (R, 5*Ctot)

            # Vertical pass: ONE 2-D MXU matmul, N = 5*Ctot.
            conv = jnp.dot(a_v, t_wide.astype(mm_dtype),
                           preferred_element_type=jnp.float32)   # (R, 5*Ctot)

            mu1 = conv[:, 0 * Ctot:1 * Ctot]
            mu2 = conv[:, 1 * Ctot:2 * Ctot]
            e11 = conv[:, 2 * Ctot:3 * Ctot]
            e22 = conv[:, 3 * Ctot:4 * Ctot]
            e12 = conv[:, 4 * Ctot:5 * Ctot]

            mu1_sq = mu1 * mu1
            mu2_sq = mu2 * mu2
            mu1_mu2 = mu1 * mu2
            sigma1_sq = e11 - mu1_sq
            sigma2_sq = e22 - mu2_sq
            sigma12 = e12 - mu1_mu2

            num = (2.0 * mu1_mu2 + C1) * (2.0 * sigma12 + C2)
            den = (mu1_sq + mu2_sq + C1) * (sigma1_sq + sigma2_sq + C2)
            ssim_map = num * pl.reciprocal(den, approx=True)      # (R, Ctot)

            # Per-plane sums via two small indicator matmuls (no awkward
            # lane-splitting reshapes): (bv,R)@(R,Ctot)@(Ctot,bh) -> (bv,bh).
            col = jnp.dot(ssim_map, o_h, preferred_element_type=jnp.float32)
            out_ref[s] = jnp.dot(o_v, col, preferred_element_type=jnp.float32)

    return kernel


def ssim(img1, img2, window_size=WINDOW_SIZE, size_average=True):
    N, C, H, W = img1.shape
    P = N * C
    radius = window_size // 2
    g = _gaussian_1d(window_size, SIGMA)

    itemsize = img1.dtype.itemsize
    cap = _vmem_capacity_bytes()
    vmem_limit = min(int(cap * 0.75), 96 * 1024 * 1024)
    budget = int(vmem_limit * 0.6)

    bv, bh = _choose_packing(P, H, W)
    R, Ctot = bv * H, bh * W
    b_tile = bv * bh                           # planes per supertile
    n_tiles = -(-P // b_tile)
    S = _choose_supertiles_per_step(n_tiles, R, Ctot, itemsize, budget)
    G = -(-n_tiles // S)
    t_pad = G * S
    P_pad = t_pad * b_tile

    mm_dtype = jnp.bfloat16 if img1.dtype == jnp.bfloat16 else jnp.float32

    def pack(img):
        x = img.reshape(P, H, W)
        if P_pad != P:
            x = jnp.pad(x, ((0, P_pad - P), (0, 0), (0, 0)))
        # (t_pad, bv, bh, H, W) -> (t_pad, bv, H, bh, W) -> (t_pad, bv*H, bh*W)
        x = x.reshape(t_pad, bv, bh, H, W).transpose(0, 1, 3, 2, 4)
        return x.reshape(t_pad, R, Ctot)

    x1 = pack(img1)
    x2 = pack(img2)

    a_v = np.kron(np.eye(bv, dtype=np.float32), _conv_matrix_left(H, g, radius))
    a_h = np.kron(np.eye(bh, dtype=np.float32), _conv_matrix_right(W, g, radius))
    ones_h = np.zeros((Ctot, bh), np.float32)
    for j in range(bh):
        ones_h[j * W:(j + 1) * W, j] = 1.0
    ones_v = np.zeros((bv, R), np.float32)
    for i in range(bv):
        ones_v[i, i * H:(i + 1) * H] = 1.0

    a_v = jnp.asarray(a_v, dtype=mm_dtype)
    a_h = jnp.asarray(a_h, dtype=mm_dtype)
    ones_h = jnp.asarray(ones_h)
    ones_v = jnp.asarray(ones_v)

    kernel = _make_ssim_kernel(S, bv, bh, H, W, mm_dtype)
    partials = pl.pallas_call(
        kernel,
        out_shape=jax.ShapeDtypeStruct((t_pad, bv, bh), jnp.float32),
        grid_spec=pltpu.PrefetchScalarGridSpec(
            num_scalar_prefetch=0,
            grid=(G,),
            in_specs=[
                pl.BlockSpec((R, R), lambda i: (0, 0)),          # A_V (resident)
                pl.BlockSpec((Ctot, Ctot), lambda i: (0, 0)),    # A_H (resident)
                pl.BlockSpec((bv, R), lambda i: (0, 0)),         # row selector
                pl.BlockSpec((Ctot, bh), lambda i: (0, 0)),      # col selector
                pl.BlockSpec((S, R, Ctot), lambda i: (i, 0, 0)),  # img1 supertiles
                pl.BlockSpec((S, R, Ctot), lambda i: (i, 0, 0)),  # img2 supertiles
            ],
            out_specs=pl.BlockSpec((S, bv, bh), lambda i: (i, 0, 0)),
        ),
        compiler_params=pltpu.CompilerParams(
            dimension_semantics=("parallel",),
            vmem_limit_bytes=vmem_limit,
        ),
    )(a_v, a_h, ones_v, ones_h, x1, x2)

    per_plane = partials.reshape(P_pad)[:P]   # drop zero-padded planes
    if size_average:
        return jnp.sum(per_plane) / (P * H * W)
    # size_average=False: ssim_map.mean(1).mean(1).mean(1) == per-image mean.
    return per_plane.reshape(N, C).sum(axis=1) / (C * H * W)


def _ssim_ref(img1, img2, window_size=WINDOW_SIZE):
    # Pure-JAX reference (grouped conv), for a sanity check only.
    C = img1.shape[1]
    g = jnp.asarray(_gaussian_1d(window_size, SIGMA))
    w2d = jnp.outer(g, g)
    window = jnp.broadcast_to(w2d, (C, 1, window_size, window_size))
    R = window_size // 2

    def conv(x):
        return jax.lax.conv_general_dilated(
            x, window, window_strides=(1, 1), padding=[(R, R), (R, R)],
            dimension_numbers=("NCHW", "OIHW", "NCHW"),
            feature_group_count=C)

    mu1, mu2 = conv(img1), conv(img2)
    mu1_sq, mu2_sq, mu1_mu2 = mu1 * mu1, mu2 * mu2, mu1 * mu2
    s1 = conv(img1 * img1) - mu1_sq
    s2 = conv(img2 * img2) - mu2_sq
    s12 = conv(img1 * img2) - mu1_mu2
    ssim_map = ((2 * mu1_mu2 + C1) * (2 * s12 + C2)) / \
               ((mu1_sq + mu2_sq + C1) * (s1 + s2 + C2))
    return ssim_map.mean()


if __name__ == "__main__":
    key = jax.random.PRNGKey(0)
    k1, k2 = jax.random.split(key)
    # SSIM module defaults to channel=3; small spatial size 16x16, batch 2.
    img1 = jax.random.uniform(k1, (2, 3, 16, 16), dtype=jnp.float32)
    img2 = jax.random.uniform(k2, (2, 3, 16, 16), dtype=jnp.float32)

    out = ssim(img1, img2)
    jax.block_until_ready(out)

    ref = _ssim_ref(img1, img2)
    np.testing.assert_allclose(np.asarray(out), np.asarray(ref),
                               rtol=2e-3, atol=2e-4)
    print("KERNEL_OK")
</pallas_src>

<mosaic_0001>
module attributes {stable_mosaic.version = 11 : i64} {
  func.func @kernel(%arg0: i32, %arg1: memref<16x16xf32, #tpu.memory_space<vmem>>, %arg2: memref<128x128xf32, #tpu.memory_space<vmem>>, %arg3: memref<1x16xf32, #tpu.memory_space<vmem>>, %arg4: memref<128x8xf32, #tpu.memory_space<vmem>>, %arg5: memref<1x16x128xf32, #tpu.memory_space<vmem>>, %arg6: memref<1x16x128xf32, #tpu.memory_space<vmem>>, %arg7: memref<1x1x8xf32, #tpu.memory_space<vmem>>) attributes {dimension_semantics = [#tpu.dimension_semantics<parallel>], iteration_bounds = array<i64: 1>, scalar_prefetch = 0 : i64, scratch_operands = 0 : i64, tpu.core_type = #tpu.core_type<tc>, window_params = [{pipeline_mode = #tpu.pipeline_mode<synchronous>, transform_indices = @transform_0, window_bounds = array<i64: 16, 16>}, {pipeline_mode = #tpu.pipeline_mode<synchronous>, transform_indices = @transform_1, window_bounds = array<i64: 128, 128>}, {pipeline_mode = #tpu.pipeline_mode<synchronous>, transform_indices = @transform_2, window_bounds = array<i64: 1, 16>}, {pipeline_mode = #tpu.pipeline_mode<synchronous>, transform_indices = @transform_3, window_bounds = array<i64: 128, 8>}, {transform_indices = @transform_4, window_bounds = array<i64: 1, 16, 128>}, {transform_indices = @transform_5, window_bounds = array<i64: 1, 16, 128>}, {transform_indices = @transform_6, window_bounds = array<i64: 1, 1, 8>}]} {
    %c0 = arith.constant 0 : index
    %c0_0 = arith.constant 0 : index
    %0 = vector.load %arg1[%c0, %c0_0] : memref<16x16xf32, #tpu.memory_space<vmem>>, vector<16x16xf32>
    %c0_1 = arith.constant 0 : index
    %c0_2 = arith.constant 0 : index
    %1 = vector.load %arg2[%c0_1, %c0_2] : memref<128x128xf32, #tpu.memory_space<vmem>>, vector<128x128xf32>
    %c0_3 = arith.constant 0 : index
    %c0_4 = arith.constant 0 : index
    %2 = vector.load %arg3[%c0_3, %c0_4] : memref<1x16xf32, #tpu.memory_space<vmem>>, vector<1x16xf32>
    %c0_5 = arith.constant 0 : index
    %c0_6 = arith.constant 0 : index
    %3 = vector.load %arg4[%c0_5, %c0_6] : memref<128x8xf32, #tpu.memory_space<vmem>>, vector<128x8xf32>
    %c0_7 = arith.constant 0 : index
    %c0_8 = arith.constant 0 : index
    %c0_9 = arith.constant 0 : index
    %4 = vector.load %arg5[%c0_7, %c0_8, %c0_9] : memref<1x16x128xf32, #tpu.memory_space<vmem>>, vector<1x16x128xf32>
    %5 = vector.shape_cast %4 : vector<1x16x128xf32> to vector<16x128xf32>
    %c0_10 = arith.constant 0 : index
    %c0_11 = arith.constant 0 : index
    %c0_12 = arith.constant 0 : index
    %6 = vector.load %arg6[%c0_10, %c0_11, %c0_12] : memref<1x16x128xf32, #tpu.memory_space<vmem>>, vector<1x16x128xf32>
    %7 = vector.shape_cast %6 : vector<1x16x128xf32> to vector<16x128xf32>
    %8 = arith.mulf %5, %5 : vector<16x128xf32>
    %9 = arith.mulf %7, %7 : vector<16x128xf32>
    %10 = arith.mulf %5, %7 : vector<16x128xf32>
    %cst = arith.constant dense<0.000000e+00> : vector<16x128xf32>
    %11 = tpu.matmul %5, %1, %cst {dimension_numbers = #tpu.dot_dimension_numbers<[1], [0], [0], [1], [0, 0, 1, 1], [], []>} : vector<16x128xf32>, vector<128x128xf32>, vector<16x128xf32> -> vector<16x128xf32>
    %cst_13 = arith.constant dense<0.000000e+00> : vector<16x128xf32>
    %12 = tpu.matmul %7, %1, %cst_13 {dimension_numbers = #tpu.dot_dimension_numbers<[1], [0], [0], [1], [0, 0, 1, 1], [], []>} : vector<16x128xf32>, vector<128x128xf32>, vector<16x128xf32> -> vector<16x128xf32>
    %cst_14 = arith.constant dense<0.000000e+00> : vector<16x128xf32>
    %13 = tpu.matmul %8, %1, %cst_14 {dimension_numbers = #tpu.dot_dimension_numbers<[1], [0], [0], [1], [0, 0, 1, 1], [], []>} : vector<16x128xf32>, vector<128x128xf32>, vector<16x128xf32> -> vector<16x128xf32>
    %cst_15 = arith.constant dense<0.000000e+00> : vector<16x128xf32>
    %14 = tpu.matmul %9, %1, %cst_15 {dimension_numbers = #tpu.dot_dimension_numbers<[1], [0], [0], [1], [0, 0, 1, 1], [], []>} : vector<16x128xf32>, vector<128x128xf32>, vector<16x128xf32> -> vector<16x128xf32>
    %cst_16 = arith.constant dense<0.000000e+00> : vector<16x128xf32>
    %15 = tpu.matmul %10, %1, %cst_16 {dimension_numbers = #tpu.dot_dimension_numbers<[1], [0], [0], [1], [0, 0, 1, 1], [], []>} : vector<16x128xf32>, vector<128x128xf32>, vector<16x128xf32> -> vector<16x128xf32>
    %16 = tpu.concatenate %11, %12, %13, %14, %15 in 1 : vector<16x128xf32>, vector<16x128xf32>, vector<16x128xf32>, vector<16x128xf32>, vector<16x128xf32> -> vector<16x640xf32>
    %cst_17 = arith.constant dense<0.000000e+00> : vector<16x640xf32>
    %17 = tpu.matmul %0, %16, %cst_17 {dimension_numbers = #tpu.dot_dimension_numbers<[1], [0], [0], [1], [0, 0, 1, 1], [], []>} : vector<16x16xf32>, vector<16x640xf32>, vector<16x640xf32> -> vector<16x640xf32>
    %18 = vector.extract_strided_slice %17 {offsets = [0, 0], sizes = [16, 128], strides = [1, 1]} : vector<16x640xf32> to vector<16x128xf32>
    %19 = vector.extract_strided_slice %17 {offsets = [0, 128], sizes = [16, 128], strides = [1, 1]} : vector<16x640xf32> to vector<16x128xf32>
    %20 = vector.extract_strided_slice %17 {offsets = [0, 256], sizes = [16, 128], strides = [1, 1]} : vector<16x640xf32> to vector<16x128xf32>
    %21 = vector.extract_strided_slice %17 {offsets = [0, 384], sizes = [16, 128], strides = [1, 1]} : vector<16x640xf32> to vector<16x128xf32>
    %22 = vector.extract_strided_slice %17 {offsets = [0, 512], sizes = [16, 128], strides = [1, 1]} : vector<16x640xf32> to vector<16x128xf32>
    %23 = arith.mulf %18, %18 : vector<16x128xf32>
    %24 = arith.mulf %19, %19 : vector<16x128xf32>
    %25 = arith.mulf %18, %19 : vector<16x128xf32>
    %26 = arith.subf %20, %23 : vector<16x128xf32>
    %27 = arith.subf %21, %24 : vector<16x128xf32>
    %28 = arith.subf %22, %25 : vector<16x128xf32>
    %cst_18 = arith.constant 2.000000e+00 : f32
    %29 = vector.broadcast %cst_18 : f32 to vector<16x128xf32>
    %30 = arith.mulf %29, %25 : vector<16x128xf32>
    %cst_19 = arith.constant 9.99999974E-5 : f32
    %31 = vector.broadcast %cst_19 : f32 to vector<16x128xf32>
    %32 = arith.addf %30, %31 : vector<16x128xf32>
    %cst_20 = arith.constant 2.000000e+00 : f32
    %33 = vector.broadcast %cst_20 : f32 to vector<16x128xf32>
    %34 = arith.mulf %33, %28 : vector<16x128xf32>
    %cst_21 = arith.constant 8.99999984E-4 : f32
    %35 = vector.broadcast %cst_21 : f32 to vector<16x128xf32>
    %36 = arith.addf %34, %35 : vector<16x128xf32>
    %37 = arith.mulf %32, %36 : vector<16x128xf32>
    %38 = arith.addf %23, %24 : vector<16x128xf32>
    %cst_22 = arith.constant 9.99999974E-5 : f32
    %39 = vector.broadcast %cst_22 : f32 to vector<16x128xf32>
    %40 = arith.addf %38, %39 : vector<16x128xf32>
    %41 = arith.addf %26, %27 : vector<16x128xf32>
    %cst_23 = arith.constant 8.99999984E-4 : f32
    %42 = vector.broadcast %cst_23 : f32 to vector<16x128xf32>
    %43 = arith.addf %41, %42 : vector<16x128xf32>
    %44 = arith.mulf %40, %43 : vector<16x128xf32>
    %45 = tpu.reciprocal %44 {approx = true} : vector<16x128xf32> -> vector<16x128xf32>
    %46 = arith.mulf %37, %45 : vector<16x128xf32>
    %cst_24 = arith.constant dense<0.000000e+00> : vector<16x8xf32>
    %47 = tpu.matmul %46, %3, %cst_24 {dimension_numbers = #tpu.dot_dimension_numbers<[1], [0], [0], [1], [0, 0, 1, 1], [], []>} : vector<16x128xf32>, vector<128x8xf32>, vector<16x8xf32> -> vector<16x8xf32>
    %cst_25 = arith.constant dense<0.000000e+00> : vector<1x8xf32>
    %48 = tpu.matmul %2, %47, %cst_25 {dimension_numbers = #tpu.dot_dimension_numbers<[1], [0], [0], [1], [0, 0, 1, 1], [], []>} : vector<1x16xf32>, vector<16x8xf32>, vector<1x8xf32> -> vector<1x8xf32>
    %c0_26 = arith.constant 0 : index
    %c0_27 = arith.constant 0 : index
    %c0_28 = arith.constant 0 : index
    %49 = vector.load %arg7[%c0_26, %c0_27, %c0_28] : memref<1x1x8xf32, #tpu.memory_space<vmem>>, vector<1x1x8xf32>
    %50 = vector.shape_cast %49 : vector<1x1x8xf32> to vector<1x8xf32>
    %51 = vector.shape_cast %48 : vector<1x8xf32> to vector<1x1x8xf32>
    tpu.vector_store %arg7[%c0_26, %c0_27, %c0_28], %51 {strides = array<i32>} : memref<1x1x8xf32, #tpu.memory_space<vmem>>, vector<1x1x8xf32>,
    return
  }
  func.func @transform_0(%arg0: i32) -> (i32, i32) {
    %c0_i32 = arith.constant 0 : i32
    %c0_i32_0 = arith.constant 0 : i32
    %c0_i32_1 = arith.constant 0 : i32
    return %c0_i32, %c0_i32_0 : i32, i32
  }
  func.func @transform_1(%arg0: i32) -> (i32, i32) {
    %c0_i32 = arith.constant 0 : i32
    %c0_i32_0 = arith.constant 0 : i32
    %c0_i32_1 = arith.constant 0 : i32
    return %c0_i32, %c0_i32_0 : i32, i32
  }
  func.func @transform_2(%arg0: i32) -> (i32, i32) {
    %c0_i32 = arith.constant 0 : i32
    %c0_i32_0 = arith.constant 0 : i32
    %c0_i32_1 = arith.constant 0 : i32
    return %c0_i32, %c0_i32_0 : i32, i32
  }
  func.func @transform_3(%arg0: i32) -> (i32, i32) {
    %c0_i32 = arith.constant 0 : i32
    %c0_i32_0 = arith.constant 0 : i32
    %c0_i32_1 = arith.constant 0 : i32
    return %c0_i32, %c0_i32_0 : i32, i32
  }
  func.func @transform_4(%arg0: i32) -> (i32, i32, i32) {
    %c0_i32 = arith.constant 0 : i32
    %c0_i32_0 = arith.constant 0 : i32
    %c0_i32_1 = arith.constant 0 : i32
    return %arg0, %c0_i32, %c0_i32_0 : i32, i32, i32
  }
  func.func @transform_5(%arg0: i32) -> (i32, i32, i32) {
    %c0_i32 = arith.constant 0 : i32
    %c0_i32_0 = arith.constant 0 : i32
    %c0_i32_1 = arith.constant 0 : i32
    return %arg0, %c0_i32, %c0_i32_0 : i32, i32, i32
  }
  func.func @transform_6(%arg0: i32) -> (i32, i32, i32) {
    %c0_i32 = arith.constant 0 : i32
    %c0_i32_0 = arith.constant 0 : i32
    %c0_i32_1 = arith.constant 0 : i32
    return %arg0, %c0_i32, %c0_i32_0 : i32, i32, i32
  }
}

</mosaic_0001>

<bundles_post_ra>
// kernel: tpu_custom_call.1
= control target key start
LH: loop header
LB: loop body
LE: loop exit
PB: predicated region body
PF: predicated region fallthrough
CT: control target
= control target key end

     0   :  { %11 = vsyncpa [#allocation3], 0  ;;  %s1851_s0 = inlined_call_operand.hbm [shape: f32[16,16], index: 0, kind: input, shape index: {}]   ;;  %s1852_s1 = inlined_call_operand.vmem [shape: f32[128,128], index: 1, kind: input, shape index: {}]   ;;  %s1853_s2 = inlined_call_operand.vmem [shape: f32[1,16], index: 2, kind: input, shape index: {}]   ;;  %s1854_s3 = inlined_call_operand.vmem [shape: f32[128,8], index: 3, kind: input, shape index: {}]   ;;  %s1855_s4 = inlined_call_operand.vmem [shape: f32[1,16,128], index: 4, kind: input, shape index: {}]   ;;  %s1856_s5 = inlined_call_operand.hbm [shape: f32[1,16,128], index: 5, kind: input, shape index: {}]   ;;  %s1857_s6 = inlined_call_operand.hbm [shape: f32[1,1,8], index: 6, kind: output, shape index: {}]  }
   0x1   :  { %12 = vsyncpa [#allocation6], 0 }
   0x2   :  { %13 = vsyncpa [#allocation4], 0  ;;  %s1547_s21 = smov [#allocation2]   ;;  %s1475_s25 = scalar_lea.hbm %s1851_s0, 256 }
   0x3   :  { %s19_s22 = sshll.u32 %s1547_s21, 4  ;;  %p1476_p0 = scmp.ne.s32.totalorder %s1851_s0, %s1475_s25  ;;  %s20_s22 = int_to_ptr.vmem [resolvable:$true] %s19_s22 }
   0x4   :  { %p1479_p1 = scmp.lt.u32.totalorder %s1475_s25, %s1851_s0 }
   0x6   :  { %p1481_p2 = pnand %p1479_p1, %p1476_p0 }
   0x8   :  { %1484 = shalt.err (!%p1481_p2)
}
   0x9   :  { %s1485_s30 = scalar_lea.vmem %s20_s22, 256  ;;  %p1490_p4 = scmp.lt.s32.totalorder %s20_s22, %s20_s22 }
   0xa   :  { %p1486_p3 = scmp.ne.s32.totalorder %s20_s22, %s1485_s30  ;;  %p1491_p5 = scmp.lt.s32.totalorder %s1485_s30, %s1485_s30 }
   0xc   :  { %p1492_p6 = por %p1491_p5, %p1490_p4 }
   0xe   :  { %p1493_p7 = pnand %p1492_p6, %p1486_p3 }
  0x10   :  { %1496 = shalt.err (!%p1493_p7)
}
  0x11   :  { %s1548_s7 = smov 128   ;;  %s1549_s8 = smov 8  }
  0x12   :  { %25 = dma.hbm_to_vmem [thread:$0]  %s1851_s0, 256, %s20_s22, [#allocation3], %s1548_s7, %s1548_s7, %s1549_s8  }
  0x13   :  { %s1550_s11 = smov [#allocation5]   ;;  %s1497_s15 = scalar_lea.hbm %s1856_s5, 256 }
  0x14   :  { %s39_s12 = sshll.u32 %s1550_s11, 4  ;;  %p1498_p8 = scmp.ne.s32.totalorder %s1856_s5, %s1497_s15  ;;  %s40_s12 = int_to_ptr.vmem [resolvable:$true] %s39_s12 }
  0x15   :  { %p1501_p9 = scmp.lt.u32.totalorder %s1497_s15, %s1856_s5 }
  0x17   :  { %p1503_p10 = pnand %p1501_p9, %p1498_p8 }
  0x19   :  { %1506 = shalt.err (!%p1503_p10)
}
  0x1a   :  { %s1507_s20 = scalar_lea.vmem %s40_s12, 256  ;;  %p1512_p12 = scmp.lt.s32.totalorder %s40_s12, %s40_s12 }
  0x1b   :  { %p1508_p11 = scmp.ne.s32.totalorder %s40_s12, %s1507_s20  ;;  %p1513_p13 = scmp.lt.s32.totalorder %s1507_s20, %s1507_s20 }
  0x1d   :  { %p1514_p0 = por %p1513_p13, %p1512_p12 }
  0x1f   :  { %p1515_p1 = pnand %p1514_p0, %p1508_p11 }
  0x21   :  { %1518 = shalt.err (!%p1515_p1)
}
  0x22   :  { %45 = dma.hbm_to_vmem [thread:$0]  %s1856_s5, 256, %s40_s12, [#allocation6], %s1548_s7, %s1548_s7, %s1549_s8  }
  0x23   :  { %1541 = dma.done.wait [#allocation3], 256  }
  0x24   :  { %1542 = vsyncadd [#allocation3], 4294967040 }
  0x25   :  { %1543 = dma.done.wait [#allocation6], 256  }
  0x26   :  { %1544 = vsyncadd [#allocation6], 4294967040  ;;  %v54_v0 = vld [vmem:[%s1852_s1] sm:$0xff]  ;;  %v55_v1 = vld [vmem:[%s1852_s1 + $0x8] sm:$0xff]  ;;  %v1551_v34 = vmov 0.0   ;;  %vm472_vm0 = vcmask 130048  }
  0x27   :  { %v56_v2 = vld [vmem:[%s1852_s1 + $0x10] sm:$0xff]  ;;  %v1623_v3 = vpack.c.bf16 %v55_v1, %v54_v0  ;;  %v57_v4 = vld [vmem:[%s1852_s1 + $0x18] sm:$0xff]  ;;  %v58_v6 = vld [vmem:[%s1852_s1 + $0x20] sm:$0xff]  ;;  %vm1553_vm1 = vmmov 0   ;;  %s1554_s10 = smov [#allocation7]   ;;  %vm892_vm2 = vcmask 57344  }
  0x28   :  { %v1628_v5 = vpack.c.bf16 %v57_v4, %v56_v2  ;;  %v59_v7 = vld [vmem:[%s1852_s1 + $0x28] sm:$0xff]  ;;  %v1647_v9 = vld [vmem:[%s1855_s4] sm:$0xff]  ;;  %v1649_v10 = vld [vmem:[#allocation5] sm:$0xff]  ;;  %s900_s11 = sshll.u32 %s1554_s10, 4  ;;  %s901_s11 = int_to_ptr.vmem [resolvable:$true] %s900_s11 }
  0x29   :  { %1257 = vmatprep.subr.bf16.mxu0 %v1623_v3  ;;  %1289 = vmatprep.subr.bf16.mxu1 %v1623_v3  ;;  %v1642_v8 = vpack.c.bf16 %v59_v7, %v58_v6  ;;  %v60_v11 = vld [vmem:[%s1852_s1 + $0x30] sm:$0xff]  ;;  %v61_v12 = vld [vmem:[%s1852_s1 + $0x38] sm:$0xff]  ;;  %v62_v14 = vld [vmem:[%s1852_s1 + $0x40] sm:$0xff]  ;;  %v91_v28 = vmul.f32 %v1647_v9, %v1647_v9  ;;  %v93_v29 = vmul.f32 %v1649_v10, %v1649_v10  ;;  %s1519_s12 = scalar_lea.vmem %s901_s11, 16  ;;  %s1523_s13 = scalar_lea.vmem %s901_s11, 32 }
  0x2a   :  { %1259 = vmatpush3.bf16.msra.mxu0 %v1623_v3  ;;  %1291 = vmatpush3.bf16.msra.mxu1 %v1623_v3  ;;  %v1663_v13 = vpack.c.bf16 %v61_v12, %v60_v11  ;;  %v63_v15 = vld [vmem:[%s1852_s1 + $0x48] sm:$0xff]  ;;  %v64_v17 = vld [vmem:[%s1852_s1 + $0x50] sm:$0xff]  ;;  %v65_v18 = vld [vmem:[%s1852_s1 + $0x58] sm:$0xff]  ;;  %v95_v32 = vmul.f32 %v1649_v10, %v1647_v9  ;;  %p1520_p2 = scmp.ne.s32.totalorder %s901_s11, %s1519_s12  ;;  %p1524_p3 = scmp.lt.s32.totalorder %s901_s11, %s901_s11 }
  0x2b   :  { %1261 = vmatprep.subr.bf16.mxu0 %v1628_v5  ;;  %1293 = vmatprep.subr.bf16.mxu1 %v1628_v5  ;;  %v1675_v16 = vpack.c.bf16 %v63_v15, %v62_v14  ;;  %v1687_v19 = vpack.c.bf16 %v65_v18, %v64_v17  ;;  %v66_v20 = vld [vmem:[%s1852_s1 + $0x60] sm:$0xff]  ;;  %v67_v21 = vld [vmem:[%s1852_s1 + $0x68] sm:$0xff]  ;;  %v68_v23 = vld [vmem:[%s1852_s1 + $0x70] sm:$0xff]  ;;  %p1525_p4 = scmp.lt.s32.totalorder %s1523_s13, %s1519_s12 }
  0x2c   :  { %1064 = vmatprep.mubr.f32.mxu0 %v1647_v9  ;;  %1099 = vmatprep.mubr.f32.mxu1 %v1649_v10  ;;  %v1699_v22 = vpack.c.bf16 %v67_v21, %v66_v20  ;;  %v69_v24 = vld [vmem:[%s1852_s1 + $0x78] sm:$0xff]  ;;  %v88_v26 = vld [vmem:[%s1855_s4 + $0x8] sm:$0xff]  ;;  %v52_v41 = vld [vmem:[#allocation2] sm:$0xff] }
  0x2d   :  { %v1711_v25 = vpack.c.bf16 %v69_v24, %v68_v23  ;;  %v90_v27 = vld [vmem:[#allocation5 + $0x8] sm:$0xff]  ;;  %v92_v30 = vmul.f32 %v88_v26, %v88_v26  ;;  %v53_v42 = vld [vmem:[#allocation2 + $0x8] sm:$0xff]  ;;  %v71_v52 = vld [vmem:[%s1854_s3] sm:$0xff]  ;;  %p1526_p5 = por %p1525_p4, %p1524_p3 }
  0x2e   :  { %1263 = vmatpush3.bf16.msra.mxu0 %v1628_v5  ;;  %1295 = vmatpush3.bf16.msra.mxu1 %v1628_v5  ;;  %v94_v31 = vmul.f32 %v90_v27, %v90_v27  ;;  %v96_v33 = vmul.f32 %v90_v27, %v88_v26  ;;  %v72_v53 = vld [vmem:[%s1854_s3 + $0x8] sm:$0xff]  ;;  %v73_v55 = vld [vmem:[%s1854_s3 + $0x10] sm:$0xff]  ;;  %v74_v56 = vld [vmem:[%s1854_s3 + $0x18] sm:$0xff] }
  0x2f   :  { %1265 = vmatprep.subr.bf16.mxu0 %v1642_v8  ;;  %1297 = vmatprep.subr.bf16.mxu1 %v1642_v8  ;;  %v1428_v54 = vpack.c.bf16 %v72_v53, %v71_v52  ;;  %v1432_v57 = vpack.c.bf16 %v74_v56, %v73_v55  ;;  %v75_v58 = vld [vmem:[%s1854_s3 + $0x20] sm:$0xff]  ;;  %v76_v59 = vld [vmem:[%s1854_s3 + $0x28] sm:$0xff]  ;;  %v77_v60 = vld [vmem:[%s1854_s3 + $0x30] sm:$0xff]  ;;  %p1527_p6 = pnand %p1526_p5, %p1520_p2 }
  0x30   :  { %v1436_v61 = vpack.c.bf16 %v76_v59, %v75_v58  ;;  %v78_v62 = vld [vmem:[%s1854_s3 + $0x38] sm:$0xff]  ;;  %v79_v0 = vld [vmem:[%s1854_s3 + $0x40] sm:$0xff]  ;;  %v80_v1 = vld [vmem:[%s1854_s3 + $0x48] sm:$0xff]  ;;  %v1552_v59 = vmov 0.0|0.0  }
  0x31   :  { %v1440_v63 = vpack.c.bf16 %v78_v62, %v77_v60  ;;  %v1444_v2 = vpack.c.bf16 %v80_v1, %v79_v0  ;;  %v82_v4 = vld [vmem:[%s1854_s3 + $0x58] sm:$0xff]  ;;  %v83_v6 = vld [vmem:[%s1854_s3 + $0x60] sm:$0xff]  ;;  %v84_v7 = vld [vmem:[%s1854_s3 + $0x68] sm:$0xff] }
  0x32   :  { %1267 = vmatpush3.bf16.msra.mxu0 %v1642_v8  ;;  %1299 = vmatpush3.bf16.msra.mxu1 %v1642_v8  ;;  %v85_v9 = vld [vmem:[%s1854_s3 + $0x70] sm:$0xff]  ;;  %v86_v10 = vld [vmem:[%s1854_s3 + $0x78] sm:$0xff] }
  0x33   :  { %1269 = vmatprep.subr.bf16.mxu0 %v1663_v13  ;;  %1301 = vmatprep.subr.bf16.mxu1 %v1663_v13  ;;  %v1456_v11 = vpack.c.bf16 %v86_v10, %v85_v9 }
  0x36   :  { %1271 = vmatpush3.bf16.msra.mxu0 %v1663_v13  ;;  %1303 = vmatpush3.bf16.msra.mxu1 %v1663_v13 }
  0x37   :  { %1273 = vmatprep.subr.bf16.mxu0 %v1675_v16  ;;  %1305 = vmatprep.subr.bf16.mxu1 %v1675_v16 }
  0x3a   :  { %1275 = vmatpush3.bf16.msra.mxu0 %v1675_v16  ;;  %1307 = vmatpush3.bf16.msra.mxu1 %v1675_v16 }
  0x3b   :  { %1277 = vmatprep.subr.bf16.mxu0 %v1687_v19  ;;  %1309 = vmatprep.subr.bf16.mxu1 %v1687_v19 }
  0x3e   :  { %1279 = vmatpush3.bf16.msra.mxu0 %v1687_v19  ;;  %1311 = vmatpush3.bf16.msra.mxu1 %v1687_v19 }
  0x3f   :  { %1281 = vmatprep.subr.bf16.mxu0 %v1699_v22  ;;  %1313 = vmatprep.subr.bf16.mxu1 %v1699_v22 }
  0x42   :  { %1283 = vmatpush3.bf16.msra.mxu0 %v1699_v22  ;;  %1315 = vmatpush3.bf16.msra.mxu1 %v1699_v22 }
  0x43   :  { %1285 = vmatprep.subr.bf16.mxu0 %v1711_v25  ;;  %1317 = vmatprep.subr.bf16.mxu1 %v1711_v25 }
  0x46   :  { %1287 = vmatpush3.bf16.msra.mxu0 %v1711_v25  ;;  %1319 = vmatpush3.bf16.msra.mxu1 %v1711_v25 }
  0x47   :  { %1321 = vmatprep.subr.bf16.mxu0 %v1623_v3  ;;  %1353 = vmatprep.subr.bf16.mxu1 %v1623_v3 }
  0x49   :  { %1065 = vmatmul.mubr.f32.vlgmr.msra.gmra.mrb[0].mxu0 %v88_v26  ;;  %1100 = vmatmul.mubr.f32.vlgmr.msra.gmra.mrb[0].mxu1 %v90_v27 }
  0x4a   :  { %1323 = vmatpush3.bf16.msra.mxu0 %v1623_v3  ;;  %1355 = vmatpush3.bf16.msra.mxu1 %v1623_v3 }
  0x4b   :  { %1325 = vmatprep.subr.bf16.mxu0 %v1628_v5  ;;  %1357 = vmatprep.subr.bf16.mxu1 %v1628_v5 }
  0x4c   :  { %1134 = vmatprep.mubr.f32.mxu0 %v91_v28  ;;  %1169 = vmatprep.mubr.f32.mxu1 %v93_v29 }
  0x4e   :  { %1327 = vmatpush3.bf16.msra.mxu0 %v1628_v5  ;;  %1359 = vmatpush3.bf16.msra.mxu1 %v1628_v5 }
  0x4f   :  { %1329 = vmatprep.subr.bf16.mxu0 %v1642_v8  ;;  %1361 = vmatprep.subr.bf16.mxu1 %v1642_v8 }
  0x52   :  { %1331 = vmatpush3.bf16.msra.mxu0 %v1642_v8  ;;  %1363 = vmatpush3.bf16.msra.mxu1 %v1642_v8 }
  0x53   :  { %1333 = vmatprep.subr.bf16.mxu0 %v1663_v13  ;;  %1365 = vmatprep.subr.bf16.mxu1 %v1663_v13 }
  0x56   :  { %1335 = vmatpush3.bf16.msra.mxu0 %v1663_v13  ;;  %1367 = vmatpush3.bf16.msra.mxu1 %v1663_v13 }
  0x57   :  { %1337 = vmatprep.subr.bf16.mxu0 %v1675_v16  ;;  %1369 = vmatprep.subr.bf16.mxu1 %v1675_v16 }
  0x5a   :  { %1339 = vmatpush3.bf16.msra.mxu0 %v1675_v16  ;;  %1371 = vmatpush3.bf16.msra.mxu1 %v1675_v16 }
  0x5b   :  { %1341 = vmatprep.subr.bf16.mxu0 %v1687_v19  ;;  %1373 = vmatprep.subr.bf16.mxu1 %v1687_v19 }
  0x5e   :  { %1343 = vmatpush3.bf16.msra.mxu0 %v1687_v19  ;;  %1375 = vmatpush3.bf16.msra.mxu1 %v1687_v19 }
  0x5f   :  { %1345 = vmatprep.subr.bf16.mxu0 %v1699_v22  ;;  %1377 = vmatprep.subr.bf16.mxu1 %v1699_v22 }
  0x62   :  { %1347 = vmatpush3.bf16.msra.mxu0 %v1699_v22  ;;  %1379 = vmatpush3.bf16.msra.mxu1 %v1699_v22 }
  0x63   :  { %1349 = vmatprep.subr.bf16.mxu0 %v1711_v25  ;;  %1381 = vmatprep.subr.bf16.mxu1 %v1711_v25 }
  0x66   :  { %1351 = vmatpush3.bf16.msra.mxu0 %v1711_v25  ;;  %1383 = vmatpush3.bf16.msra.mxu1 %v1711_v25 }
  0x67   :  { %1385 = vmatprep.subr.bf16.mxu0 %v1623_v3 }
  0x69   :  { %1135 = vmatmul.mubr.f32.vlgmr.msra.gmra.mrb[2].mxu0 %v92_v30  ;;  %1170 = vmatmul.mubr.f32.vlgmr.msra.gmra.mrb[2].mxu1 %v94_v31 }
  0x6a   :  { %1387 = vmatpush3.bf16.msra.mxu0 %v1623_v3  ;;  %1204 = vmatprep.mubr.f32.mxu0 %v95_v32  ;;  %v81_v3 = vld [vmem:[%s1854_s3 + $0x50] sm:$0xff] }
  0x6b   :  { %1389 = vmatprep.subr.bf16.mxu0 %v1628_v5  ;;  %620 = vmatprep.mubr.f32.mxu1 %v1551_v34 }
  0x6e   :  { %1391 = vmatpush3.bf16.msra.mxu0 %v1628_v5  ;;  %v1448_v5 = vpack.c.bf16 %v82_v4, %v81_v3 }
  0x6f   :  { %1393 = vmatprep.subr.bf16.mxu0 %v1642_v8 }
  0x72   :  { %1395 = vmatpush3.bf16.msra.mxu0 %v1642_v8  ;;  %v1452_v8 = vpack.c.bf16 %v84_v7, %v83_v6 }
  0x73   :  { %1397 = vmatprep.subr.bf16.mxu0 %v1663_v13 }
  0x76   :  { %1399 = vmatpush3.bf16.msra.mxu0 %v1663_v13 }
  0x77   :  { %1401 = vmatprep.subr.bf16.mxu0 %v1675_v16 }
  0x7a   :  { %1403 = vmatpush3.bf16.msra.mxu0 %v1675_v16 }
  0x7b   :  { %1405 = vmatprep.subr.bf16.mxu0 %v1687_v19 }
  0x7e   :  { %1407 = vmatpush3.bf16.msra.mxu0 %v1687_v19 }
  0x7f   :  { %1409 = vmatprep.subr.bf16.mxu0 %v1699_v22 }
  0x82   :  { %1411 = vmatpush3.bf16.msra.mxu0 %v1699_v22 }
  0x83   :  { %1413 = vmatprep.subr.bf16.mxu0 %v1711_v25 }
  0x86   :  { %1415 = vmatpush3.bf16.msra.mxu0 %v1711_v25 }
  0x89   :  { %1205 = vmatmul.mubr.f32.vlgmr.msra.gmra.mrb[4].mxu0 %v96_v33 }
  0x8a   :  { %543 = vmatprep.mubr.f32.mxu0 %v1551_v34 }
 0x11c   :  { %v1066_v35 = vpop.f32.mrb[0].mxu0  ;;  %v1101_v36 = vpop.f32.mrb[0].mxu1 }
 0x11d   :  { %v163_v37 = vpop.f32.mrb[1].mxu0  ;;  %v238_v38 = vpop.f32.mrb[1].mxu1 }
 0x11e   :  { %v1418_v39 = vpack.c.bf16 %v1066_v35, %v163_v37  ;;  %v1416_v40 = vpack.c.bf16 %v1101_v36, %v238_v38 }
 0x120   :  { %1417 = vmatprep.subr.bf16.mxu0 %v1416_v40 }
 0x121   :  { %1419 = vmatpush1.bf16.msra.mxu0 %v1418_v39 }
 0x122   :  { %1460 = vmatprep.subr.bf16.mxu0 %v1552_v59 }
 0x124   :  { %910 = vmatmul.mubr.msk.f32.vlgmr.msra.gmra.mrb[6].mxu0 %vm472_vm0, %v52_v41 }
 0x125   :  { %549 = vmatprep.mubr.f32.mxu0 %v1551_v34 }
 0x128   :  { %911 = vmatmul.mubr.msk.f32.gmra.mrb[8].mxu0 %vm472_vm0, %v53_v42 }
 0x129   :  { %1253 = vmatprep.mubr.msk.f32.mxu0 %vm1553_vm1, %v1551_v34 }
 0x13c   :  { %v1136_v43 = vpop.f32.mrb[2].mxu0  ;;  %v1171_v44 = vpop.f32.mrb[2].mxu1 }
 0x13d   :  { %v313_v45 = vpop.f32.mrb[3].mxu0  ;;  %v388_v46 = vpop.f32.mrb[3].mxu1 }
 0x13e   :  { %v1422_v47 = vpack.c.bf16 %v1136_v43, %v313_v45  ;;  %v1420_v48 = vpack.c.bf16 %v1171_v44, %v388_v46 }
 0x140   :  { %1421 = vmatprep.subr.bf16.mxu1 %v1420_v48 }
 0x141   :  { %1423 = vmatpush1.bf16.msra.mxu1 %v1422_v47 }
 0x144   :  { %912 = vmatmul.mubr.msk.f32.vlgmr.msra.gmra.mrb[4].mxu1 %vm472_vm0, %v52_v41 }
 0x145   :  { %626 = vmatprep.mubr.f32.mxu1 %v1551_v34 }
 0x148   :  { %913 = vmatmul.mubr.msk.f32.gmra.mrb[6].mxu1 %vm472_vm0, %v53_v42 }
 0x149   :  { %1211 = vmatprep.mubr.msk.f32.mxu1 %vm472_vm0, %v52_v41 }
 0x15c   :  { %v1206_v49 = vpop.f32.mrb[4].mxu0 }
 0x15d   :  { %v463_v50 = vpop.f32.mrb[5].mxu0 }
 0x15e   :  { %v1424_v51 = vpack.c.bf16 %v1206_v49, %v463_v50 }
 0x160   :  { %1425 = vmatprep.subr.bf16.mxu1 %v1424_v51 }
 0x161   :  { %1427 = vmatpush3.bf16.msra.mxu1 %v1424_v51 }
 0x162   :  { %1429 = vmatprep.subr.bf16.mxu1 %v1428_v54 }
 0x164   :  { %1212 = vmatmul.mubr.msk.f32.vlgmr.msra.gmra.mrb[8].mxu1 %vm472_vm0, %v53_v42 }
 0x165   :  { %1431 = vmatpush3.bf16.msra.mxu1 %v1428_v54 }
 0x166   :  { %1433 = vmatprep.subr.bf16.mxu1 %v1432_v57 }
 0x169   :  { %1435 = vmatpush3.bf16.msra.mxu1 %v1432_v57 }
 0x16a   :  { %1437 = vmatprep.subr.bf16.mxu1 %v1436_v61 }
 0x16d   :  { %1439 = vmatpush3.bf16.msra.mxu1 %v1436_v61 }
 0x16e   :  { %1441 = vmatprep.subr.bf16.mxu1 %v1440_v63 }
 0x171   :  { %1443 = vmatpush3.bf16.msra.mxu1 %v1440_v63  ;;  %v70_v63 = vld [vmem:[%s1853_s2] sm:$0x1] }
 0x172   :  { %1445 = vmatprep.subr.bf16.mxu1 %v1444_v2 }
 0x175   :  { %1447 = vmatpush3.bf16.msra.mxu1 %v1444_v2 }
 0x176   :  { %1449 = vmatprep.subr.bf16.mxu1 %v1448_v5 }
 0x179   :  { %1451 = vmatpush3.bf16.msra.mxu1 %v1448_v5 }
 0x17a   :  { %1453 = vmatprep.subr.bf16.mxu1 %v1452_v8 }
 0x17d   :  { %1455 = vmatpush3.bf16.msra.mxu1 %v1452_v8 }
 0x17e   :  { %1457 = vmatprep.subr.bf16.mxu1 %v1456_v11 }
 0x181   :  { %1459 = vmatpush3.bf16.msra.mxu1 %v1456_v11 }
 0x1f7   :  { %v545_v12 = vpop.f32.mrb[6].mxu0 }
 0x1f8   :  { %v547_v13 = vpop.f32.mrb[7].mxu0  ;;  %v708_v14 = vmul.f32 %v545_v12, %v545_v12 }
 0x1f9   :  { %v710_v15 = vmul.f32 %v547_v13, %v547_v13  ;;  %v712_v16 = vmul.f32 %v547_v13, %v545_v12 }
 0x1fb   :  { %v730_v17 = vadd.f32 %v710_v15, %v708_v14  ;;  %v551_v18 = vpop.f32.mrb[8].mxu0  ;;  %v720_v45 = vmul.f32 2.0, %v712_v16 }
 0x1fc   :  { %v553_v19 = vpop.f32.mrb[9].mxu0  ;;  %v709_v20 = vmul.f32 %v551_v18, %v551_v18 }
 0x1fd   :  { %v711_v21 = vmul.f32 %v553_v19, %v553_v19  ;;  %v713_v22 = vmul.f32 %v553_v19, %v551_v18  ;;  %v732_v28 = vadd.f32 0.0001, %v730_v17  ;;  %v722_v52 = vadd.f32 0.0001, %v720_v45 }
 0x1ff   :  { %v731_v23 = vadd.f32 %v711_v21, %v709_v20  ;;  %v721_v42 = vmul.f32 2.0, %v713_v22 }
 0x201   :  { %v733_v37 = vadd.f32 0.0001, %v731_v23  ;;  %v723_v49 = vadd.f32 0.0001, %v721_v42 }
 0x217   :  { %v622_v24 = vpop.f32.mrb[4].mxu1 }
 0x218   :  { %v714_v25 = vsub.f32 %v622_v24, %v708_v14  ;;  %v624_v26 = vpop.f32.mrb[5].mxu1 }
 0x219   :  { %v716_v27 = vsub.f32 %v624_v26, %v710_v15 }
 0x21b   :  { %v734_v29 = vadd.f32 %v716_v27, %v714_v25  ;;  %v628_v30 = vpop.f32.mrb[6].mxu1 }
 0x21c   :  { %v715_v31 = vsub.f32 %v628_v30, %v709_v20  ;;  %v630_v32 = vpop.f32.mrb[7].mxu1 }
 0x21d   :  { %v736_v33 = vadd.f32 0.0009, %v734_v29  ;;  %v717_v35 = vsub.f32 %v630_v32, %v711_v21 }
 0x21f   :  { %v738_v36 = vmul.f32 %v736_v33, %v732_v28  ;;  %v735_v38 = vadd.f32 %v717_v35, %v715_v31 }
 0x221   :  { %v737_v39 = vadd.f32 0.0009, %v735_v38 }
 0x223   :  { %v739_v40 = vmul.f32 %v737_v39, %v733_v37 }
 0x225   :  { %1471 = vrcp.f32 %v739_v40 }
 0x226   :  { %1473 = vrcp.f32 %v738_v36 }
 0x22f   :  { %v1472_v51 = vpop.eup %1471 }
 0x230   :  { %v1474_v56 = vpop.eup %1473 }
 0x237   :  { %v1213_v41 = vpop.f32.mrb[8].mxu1 }
 0x238   :  { %v719_v43 = vsub.f32 %v1213_v41, %v713_v22  ;;  %v699_v44 = vpop.f32.mrb[9].mxu1 }
 0x239   :  { %v718_v46 = vsub.f32 %v699_v44, %v712_v16 }
 0x23a   :  { %v725_v47 = vmul.f32 2.0, %v719_v43 }
 0x23b   :  { %v724_v48 = vmul.f32 2.0, %v718_v46 }
 0x23c   :  { %v727_v50 = vadd.f32 0.0009, %v725_v47 }
 0x23d   :  { %v726_v53 = vadd.f32 0.0009, %v724_v48 }
 0x23e   :  { %v729_v54 = vmul.f32 %v727_v50, %v723_v49 }
 0x23f   :  { %v728_v55 = vmul.f32 %v726_v53, %v722_v52 }
 0x240   :  { %v743_v57 = vmul.f32 %v1472_v51, %v729_v54 }
 0x241   :  { %v742_v58 = vmul.f32 %v1474_v56, %v728_v55 }
 0x243   :  { %1246 = vmatprep.mubr.f32.mxu1 %v742_v58 }
 0x244   :  { %1247 = vmatmul.mubr.f32.vlgmr.msra.gmra.mrb[10].mxu1 %v743_v57 }
 0x317   :  { %v1248_v60 = vpop.f32.mrb[10].mxu1 }
 0x318   :  { %v810_v61 = vpop.f32.mrb[11].mxu1 }
 0x319   :  { %v1461_v62 = vpack.c.bf16 %v1248_v60, %v810_v61 }
 0x31b   :  { %1462 = vmatpush3.bf16.msra.mxu0 %v1461_v62 }
 0x31e   :  { %1254 = vmatmul.mubr.msk.f32.vlgmr.msra.gmra.mrb[10].mxu0 %vm472_vm0, %v70_v63 }
 0x3f1   :  { %v888_v0 = vpop.f32.mrb[10].mxu0 }
 0x3f2   :  { %v1255_v1 = vpop.f32.mrb[11].mxu0  ;;  %893 = vst.msk [vmem:[#allocation7] sm:$0x1] %vm892_vm2, %v888_v0 }
 0x3f3   :  { %1530 = shalt.err (!%p1527_p6)
}
 0x3f4   :  { %s1531_s2 = scalar_lea.hbm %s1857_s6, 16 }
 0x3f5   :  { %p1532_p7 = scmp.ne.s32.totalorder %s1857_s6, %s1531_s2  ;;  %p1535_p8 = scmp.lt.u32.totalorder %s1531_s2, %s1857_s6 }
 0x3f7   :  { %p1537_p9 = pnand %p1535_p8, %p1532_p7 }
 0x3f9   :  { %1540 = shalt.err (!%p1537_p9)
}
 0x3fa   :  { %903 = dma.vmem_to_hbm [thread:$0]  %s901_s11, 16, %s1857_s6, [#allocation4]  }
 0x3fb   :  { %1545 = dma.done.wait [#allocation4], 16  }
 0x3fc   :  { %1546 = vsyncadd [#allocation4], 4294967280 }
 0x3fd   :  { %907 = vsyncpa [#allocation3], 1 }
 0x3fe   :  { %908 = vsyncpa [#allocation6], 1 }
 0x3ff   :  { %909 = vsyncpa [#allocation4], 1 }

</bundles_post_ra>
